<compile_context>
chip_gen: v7x
topology: tpu7x:2x2x1
jax: 0.10.0
libtpu: 0.0.40
codegen_flags: <defaults>
</compile_context>

<pallas_src>
import jax
import jax.numpy as jnp
from jax.experimental import pallas as pl
from jax.experimental.pallas import tpu as pltpu

EPS = 1e-5  # RevIN default eps


def _forecast_kernel(x_ref, aw_ref, ab_ref, wb_ref, bb_ref, o_ref):
    # x_ref:  (L, N_BLK)  time-major slab: columns are (batch, channel) pairs
    # aw_ref: (1, N_BLK)  RevIN affine_weight, tiled per column
    # ab_ref: (1, N_BLK)  RevIN affine_bias,  tiled per column
    # wb_ref: (P, L)      backbone linear weight (time -> horizon)
    # bb_ref: (P, 1)      backbone linear bias
    # o_ref:  (P, N_BLK)  denormalized forecast slab
    x = x_ref[...]                    # (L, N) f32
    aw = aw_ref[...]                  # (1, N)
    ab = ab_ref[...]                  # (1, N)
    wb = wb_ref[...]                  # (P, L)
    bb = bb_ref[...]                  # (P, 1)

    # ---- RevIN statistics over the time (sublane) axis ----
    mean = jnp.mean(x, axis=0, keepdims=True)                    # (1, N)
    var = jnp.mean((x - mean) ** 2, axis=0, keepdims=True)       # unbiased=False
    veps = var + EPS
    inv_std = jax.lax.rsqrt(veps)                                # EUP rsqrt
    stdev = veps * inv_std                                       # = sqrt(var + eps)

    # ---- normalize (affine folded into the matmul epilogue) ----
    z = (x - mean) * inv_std                                     # (L, N)

    # ---- backbone: Linear over the time dimension (single MXU matmul) ----
    ymm = jnp.dot(wb, z, preferred_element_type=jnp.float32)     # (P, N)

    # Affine fold-through: wb @ (z*aw + ab) + bb = (wb@z)*aw + rowsum(wb)*ab + bb
    rs = jnp.sum(wb, axis=1, keepdims=True)                      # (P, 1)
    y = ymm * aw + rs * ab + bb                                  # (P, N)

    # ---- RevIN inverse (denormalize) ----
    inv_aw = 1.0 / (aw + EPS * EPS)                              # (1, N), cheap
    o_ref[...] = ((y - ab) * inv_aw * stdev + mean).astype(o_ref.dtype)


def _round_up(a, b):
    return -(-a // b) * b


def forecast_model(x, affine_weight, affine_bias, backbone_w, backbone_b):
    """x: (B, L, C) f32; returns (B, P, C) f32."""
    B, L, C = x.shape
    P = backbone_w.shape[0]
    N = B * C

    # Lane-dense relayout: (B, L, C) -> (L, B*C); column n = b*C + c.
    x2d = jnp.transpose(x.astype(jnp.float32), (1, 0, 2)).reshape(L, N)

    # Per-column affine params: aw[b*C + c] = affine_weight[c].
    aw = jnp.tile(affine_weight.astype(jnp.float32), B).reshape(1, N)
    ab = jnp.tile(affine_bias.astype(jnp.float32), B).reshape(1, N)

    wb = backbone_w.astype(jnp.float32)                 # (P, L)
    bb = backbone_b.reshape(P, 1).astype(jnp.float32)   # (P, 1)

    # Lane block width: multiple of 128, sized so the double-buffered streamed
    # blocks (x: L x N_BLK, out: P x N_BLK, f32) stay around ~8 MiB.
    n_min = _round_up(N, 128)
    per_col_bytes = 4 * (L + P) * 2                     # double-buffered in + out
    n_blk = max(128, min(2048, ((8 << 20) // max(per_col_bytes, 1)) // 128 * 128))
    n_blk = min(n_blk, n_min)
    n_pad = _round_up(N, n_blk)

    pad = n_pad - N
    if pad:
        # Pad weight with 1 / bias & data with 0 so padded columns stay finite.
        x2d = jnp.pad(x2d, ((0, 0), (0, pad)))
        aw = jnp.pad(aw, ((0, 0), (0, pad)), constant_values=1.0)
        ab = jnp.pad(ab, ((0, 0), (0, pad)))

    out2d = pl.pallas_call(
        _forecast_kernel,
        out_shape=jax.ShapeDtypeStruct((P, n_pad), jnp.float32),
        grid_spec=pltpu.PrefetchScalarGridSpec(
            num_scalar_prefetch=0,
            grid=(n_pad // n_blk,),
            in_specs=[
                pl.BlockSpec((L, n_blk), lambda n: (0, n)),
                pl.BlockSpec((1, n_blk), lambda n: (0, n)),
                pl.BlockSpec((1, n_blk), lambda n: (0, n)),
                pl.BlockSpec((P, L), lambda n: (0, 0)),
                pl.BlockSpec((P, 1), lambda n: (0, 0)),
            ],
            out_specs=pl.BlockSpec((P, n_blk), lambda n: (0, n)),
        ),
        compiler_params=pltpu.CompilerParams(
            dimension_semantics=("parallel",),
            vmem_limit_bytes=48 * 1024 * 1024,
        ),
    )(x2d, aw, ab, wb, bb)

    # (P, N) -> (P, B, C) -> (B, P, C)
    out = out2d[:, :N].reshape(P, B, C).transpose(1, 0, 2)
    return out


def forecast_model_ref(x, affine_weight, affine_bias, backbone_w, backbone_b):
    """Pure-JAX reference mirroring the PyTorch ForecastModel(RevIN) forward."""
    mean = jnp.mean(x, axis=1, keepdims=True)                       # (B,1,C)
    stdev = jnp.sqrt(jnp.var(x, axis=1, keepdims=True) + EPS)       # (B,1,C)
    xn = (x - mean) / stdev
    xn = xn * affine_weight + affine_bias
    # backbone: Linear(seq_len -> pred_len) along time axis
    y = jnp.einsum("pl,blc->bpc", backbone_w, xn) + backbone_b[None, :, None]
    out = (y - affine_bias) / (affine_weight + EPS * EPS)
    out = out * stdev + mean
    return out


if __name__ == "__main__":
    B, L, P, C = 2, 16, 8, 8    # batch, seq_len, pred_len, num_features

    key = jax.random.PRNGKey(0)
    kx, kw, kb, kaw, kab = jax.random.split(key, 5)

    x = jax.random.normal(kx, (B, L, C), dtype=jnp.float32)

    # RevIN affine params (trained values; init in PyTorch is ones/zeros).
    affine_weight = 1.0 + 0.1 * jax.random.normal(kaw, (C,), dtype=jnp.float32)
    affine_bias = 0.05 * jax.random.normal(kab, (C,), dtype=jnp.float32)

    # Deterministic synthetic backbone (Linear seq_len -> pred_len over time).
    backbone_w = jax.random.normal(kw, (P, L), dtype=jnp.float32) / jnp.sqrt(L)
    backbone_b = jax.random.normal(kb, (P,), dtype=jnp.float32) * 0.01

    out = forecast_model(x, affine_weight, affine_bias, backbone_w, backbone_b)
    out = jax.block_until_ready(out)

    ref = forecast_model_ref(x, affine_weight, affine_bias, backbone_w, backbone_b)
    assert out.shape == (B, P, C)
    assert jnp.allclose(out, ref, atol=1e-4, rtol=1e-4), "mismatch vs reference"

    # TODO(synk): DishTS / Transfer processor variants and arbitrary backbones
    # are not implemented; only the RevIN + Linear(seq_len->pred_len) path is.

    print("KERNEL_OK")
</pallas_src>

<mosaic_0001>
module attributes {stable_mosaic.version = 11 : i64} {
  func.func @_forecast_kernel(%arg0: i32, %arg1: memref<16x128xf32, #tpu.memory_space<vmem>>, %arg2: memref<1x128xf32, #tpu.memory_space<vmem>>, %arg3: memref<1x128xf32, #tpu.memory_space<vmem>>, %arg4: memref<8x16xf32, #tpu.memory_space<vmem>>, %arg5: memref<8x1xf32, #tpu.memory_space<vmem>>, %arg6: memref<8x128xf32, #tpu.memory_space<vmem>>) attributes {dimension_semantics = [#tpu.dimension_semantics<parallel>], iteration_bounds = array<i64: 1>, scalar_prefetch = 0 : i64, scratch_operands = 0 : i64, tpu.core_type = #tpu.core_type<tc>, window_params = [{transform_indices = @transform_0, window_bounds = array<i64: 16, 128>}, {transform_indices = @transform_1, window_bounds = array<i64: 1, 128>}, {transform_indices = @transform_2, window_bounds = array<i64: 1, 128>}, {pipeline_mode = #tpu.pipeline_mode<synchronous>, transform_indices = @transform_3, window_bounds = array<i64: 8, 16>}, {pipeline_mode = #tpu.pipeline_mode<synchronous>, transform_indices = @transform_4, window_bounds = array<i64: 8, 1>}, {transform_indices = @transform_5, window_bounds = array<i64: 8, 128>}]} {
    %c0 = arith.constant 0 : index
    %c0_0 = arith.constant 0 : index
    %0 = vector.load %arg1[%c0, %c0_0] : memref<16x128xf32, #tpu.memory_space<vmem>>, vector<16x128xf32>
    %c0_1 = arith.constant 0 : index
    %c0_2 = arith.constant 0 : index
    %1 = vector.load %arg2[%c0_1, %c0_2] : memref<1x128xf32, #tpu.memory_space<vmem>>, vector<1x128xf32>
    %c0_3 = arith.constant 0 : index
    %c0_4 = arith.constant 0 : index
    %2 = vector.load %arg3[%c0_3, %c0_4] : memref<1x128xf32, #tpu.memory_space<vmem>>, vector<1x128xf32>
    %c0_5 = arith.constant 0 : index
    %c0_6 = arith.constant 0 : index
    %3 = vector.load %arg4[%c0_5, %c0_6] : memref<8x16xf32, #tpu.memory_space<vmem>>, vector<8x16xf32>
    %c0_7 = arith.constant 0 : index
    %c0_8 = arith.constant 0 : index
    %4 = vector.load %arg5[%c0_7, %c0_8] : memref<8x1xf32, #tpu.memory_space<vmem>>, vector<8x1xf32>
    %cst = arith.constant dense<0.000000e+00> : vector<128xf32>
    %5 = vector.multi_reduction <add>, %0, %cst [0] : vector<16x128xf32> to vector<128xf32>
    %6 = vector.shape_cast %5 : vector<128xf32> to vector<1x128xf32>
    %cst_9 = arith.constant 1.600000e+01 : f32
    %7 = vector.broadcast %cst_9 : f32 to vector<1x128xf32>
    %8 = arith.divf %6, %7 : vector<1x128xf32>
    %9 = vector.broadcast %8 : vector<1x128xf32> to vector<16x128xf32>
    %10 = arith.subf %0, %9 : vector<16x128xf32>
    %11 = arith.mulf %10, %10 : vector<16x128xf32>
    %cst_10 = arith.constant dense<0.000000e+00> : vector<128xf32>
    %12 = vector.multi_reduction <add>, %11, %cst_10 [0] : vector<16x128xf32> to vector<128xf32>
    %13 = vector.shape_cast %12 : vector<128xf32> to vector<1x128xf32>
    %cst_11 = arith.constant 1.600000e+01 : f32
    %14 = vector.broadcast %cst_11 : f32 to vector<1x128xf32>
    %15 = arith.divf %13, %14 : vector<1x128xf32>
    %cst_12 = arith.constant 9.99999974E-6 : f32
    %16 = vector.broadcast %cst_12 : f32 to vector<1x128xf32>
    %17 = arith.addf %15, %16 : vector<1x128xf32>
    %18 = math.rsqrt %17 : vector<1x128xf32>
    %19 = arith.mulf %17, %18 : vector<1x128xf32>
    %20 = vector.broadcast %8 : vector<1x128xf32> to vector<16x128xf32>
    %21 = arith.subf %0, %20 : vector<16x128xf32>
    %22 = vector.broadcast %18 : vector<1x128xf32> to vector<16x128xf32>
    %23 = arith.mulf %21, %22 : vector<16x128xf32>
    %cst_13 = arith.constant dense<0.000000e+00> : vector<8x128xf32>
    %24 = tpu.matmul %3, %23, %cst_13 {dimension_numbers = #tpu.dot_dimension_numbers<[1], [0], [0], [1], [0, 0, 1, 1], [], []>} : vector<8x16xf32>, vector<16x128xf32>, vector<8x128xf32> -> vector<8x128xf32>
    %cst_14 = arith.constant dense<0.000000e+00> : vector<8xf32>
    %25 = vector.multi_reduction <add>, %3, %cst_14 [1] : vector<8x16xf32> to vector<8xf32>
    %26 = vector.shape_cast %25 : vector<8xf32> to vector<8x1xf32>
    %27 = vector.broadcast %1 : vector<1x128xf32> to vector<8x128xf32>
    %28 = arith.mulf %24, %27 : vector<8x128xf32>
    %29 = vector.broadcast %26 : vector<8x1xf32> to vector<8x128xf32>
    %30 = vector.broadcast %2 : vector<1x128xf32> to vector<8x128xf32>
    %31 = arith.mulf %29, %30 : vector<8x128xf32>
    %32 = arith.addf %28, %31 : vector<8x128xf32>
    %33 = vector.broadcast %4 : vector<8x1xf32> to vector<8x128xf32>
    %34 = arith.addf %32, %33 : vector<8x128xf32>
    %cst_15 = arith.constant 1.000000e-10 : f32
    %35 = vector.broadcast %cst_15 : f32 to vector<1x128xf32>
    %36 = arith.addf %1, %35 : vector<1x128xf32>
    %cst_16 = arith.constant 1.000000e+00 : f32
    %37 = vector.broadcast %cst_16 : f32 to vector<1x128xf32>
    %38 = arith.divf %37, %36 : vector<1x128xf32>
    %39 = vector.broadcast %2 : vector<1x128xf32> to vector<8x128xf32>
    %40 = arith.subf %34, %39 : vector<8x128xf32>
    %41 = vector.broadcast %38 : vector<1x128xf32> to vector<8x128xf32>
    %42 = arith.mulf %40, %41 : vector<8x128xf32>
    %43 = vector.broadcast %19 : vector<1x128xf32> to vector<8x128xf32>
    %44 = arith.mulf %42, %43 : vector<8x128xf32>
    %45 = vector.broadcast %8 : vector<1x128xf32> to vector<8x128xf32>
    %46 = arith.addf %44, %45 : vector<8x128xf32>
    %c0_17 = arith.constant 0 : index
    %c0_18 = arith.constant 0 : index
    %47 = vector.load %arg6[%c0_17, %c0_18] : memref<8x128xf32, #tpu.memory_space<vmem>>, vector<8x128xf32>
    tpu.vector_store %arg6[%c0_17, %c0_18], %46 {strides = array<i32>} : memref<8x128xf32, #tpu.memory_space<vmem>>, vector<8x128xf32>,
    return
  }
  func.func @transform_0(%arg0: i32) -> (i32, i32) {
    %c0_i32 = arith.constant 0 : i32
    %c0_i32_0 = arith.constant 0 : i32
    return %c0_i32, %arg0 : i32, i32
  }
  func.func @transform_1(%arg0: i32) -> (i32, i32) {
    %c0_i32 = arith.constant 0 : i32
    %c0_i32_0 = arith.constant 0 : i32
    return %c0_i32, %arg0 : i32, i32
  }
  func.func @transform_2(%arg0: i32) -> (i32, i32) {
    %c0_i32 = arith.constant 0 : i32
    %c0_i32_0 = arith.constant 0 : i32
    return %c0_i32, %arg0 : i32, i32
  }
  func.func @transform_3(%arg0: i32) -> (i32, i32) {
    %c0_i32 = arith.constant 0 : i32
    %c0_i32_0 = arith.constant 0 : i32
    %c0_i32_1 = arith.constant 0 : i32
    return %c0_i32, %c0_i32_0 : i32, i32
  }
  func.func @transform_4(%arg0: i32) -> (i32, i32) {
    %c0_i32 = arith.constant 0 : i32
    %c0_i32_0 = arith.constant 0 : i32
    %c0_i32_1 = arith.constant 0 : i32
    return %c0_i32, %c0_i32_0 : i32, i32
  }
  func.func @transform_5(%arg0: i32) -> (i32, i32) {
    %c0_i32 = arith.constant 0 : i32
    %c0_i32_0 = arith.constant 0 : i32
    return %c0_i32, %arg0 : i32, i32
  }
}

</mosaic_0001>

<bundles_post_ra>
// kernel: tpu_custom_call.1
= control target key start
LH: loop header
LB: loop body
LE: loop exit
PB: predicated region body
PF: predicated region fallthrough
CT: control target
= control target key end

     0   :  { %10 = vsyncpa [#allocation3], 0  ;;  %s346_s0 = inlined_call_operand.hbm [shape: f32[16,128], index: 0, kind: input, shape index: {}]   ;;  %s347_s1 = inlined_call_operand.vmem [shape: f32[1,128], index: 1, kind: input, shape index: {}]   ;;  %s348_s2 = inlined_call_operand.vmem [shape: f32[1,128], index: 2, kind: input, shape index: {}]   ;;  %s349_s3 = inlined_call_operand.vmem [shape: f32[8,16], index: 3, kind: input, shape index: {}]   ;;  %s350_s4 = inlined_call_operand.vmem [shape: f32[8,1], index: 4, kind: input, shape index: {}]   ;;  %s351_s5 = inlined_call_operand.hbm [shape: f32[8,128], index: 5, kind: output, shape index: {}]  }
   0x1   :  { %11 = vsyncpa [#allocation4], 0  ;;  %s270_s18 = smov [#allocation2]   ;;  %s222_s22 = scalar_lea.hbm %s346_s0, 256 }
   0x2   :  { %s17_s19 = sshll.u32 %s270_s18, 4  ;;  %p223_p0 = scmp.ne.s32.totalorder %s346_s0, %s222_s22  ;;  %s18_s19 = int_to_ptr.vmem [resolvable:$true] %s17_s19 }
   0x3   :  { %p226_p1 = scmp.lt.u32.totalorder %s222_s22, %s346_s0 }
   0x5   :  { %p228_p2 = pnand %p226_p1, %p223_p0 }
   0x7   :  { %231 = shalt.err (!%p228_p2)
}
   0x8   :  { %s232_s27 = scalar_lea.vmem %s18_s19, 256  ;;  %p237_p4 = scmp.lt.s32.totalorder %s18_s19, %s18_s19 }
   0x9   :  { %p233_p3 = scmp.ne.s32.totalorder %s18_s19, %s232_s27  ;;  %p238_p5 = scmp.lt.s32.totalorder %s232_s27, %s232_s27 }
   0xb   :  { %p239_p6 = por %p238_p5, %p237_p4 }
   0xd   :  { %p240_p7 = pnand %p239_p6, %p233_p3 }
   0xf   :  { %243 = shalt.err (!%p240_p7)
}
  0x10   :  { %s271_s28 = smov 128   ;;  %s272_s29 = smov 8  }
  0x11   :  { %23 = dma.hbm_to_vmem [thread:$0]  %s346_s0, 256, %s18_s19, [#allocation3], %s271_s28, %s271_s28, %s272_s29  }
  0x12   :  { %266 = dma.done.wait [#allocation3], 256  }
  0x13   :  { %267 = vsyncadd [#allocation3], 4294967040  ;;  %v273_v0 = vmov 0.0|0.0   ;;  %vm274_vm0 = vmmov 0   ;;  %v275_v1 = vmov 0.0   ;;  %v276_v2 = vmov 0  }
  0x14   :  { %206 = vmatprep.subr.bf16.mxu0 %v273_v0  ;;  %203 = vmatprep.mubr.msk.f32.mxu0 %vm274_vm0, %v275_v1  ;;  %v35_v3 = vld [vmem:[#allocation2] sm:$0xff]  ;;  %v36_v4 = vld [vmem:[#allocation2 + $0x8] sm:$0xff]  ;;  %vm67_vm1 = vcmask 130048   ;;  %v145_v34 = vlaneseq }
  0x15   :  { %217 = vset.pattern.permute.xlu0 %v276_v2  ;;  %v39_v5 = vld [vmem:[%s349_s3] sm:$0xff]  ;;  %v41_v6 = vadd.f32 %v36_v4, %v35_v3 }
  0x16   :  { %v141_v7 = vsel %vm67_vm1, %v39_v5, 0.0  ;;  %v40_v20 = vld [vmem:[%s350_s4] sm:$0xff]  ;;  %v146_v36 = vshrl.u32 %v145_v34, 7 }
  0x17   :  { %142 = vadd.xlane.f32.xlu0 %v141_v7  ;;  %v42_v8 = vrot.slane %v41_v6, 4  ;;  %v37_v33 = vld [vmem:[%s347_s1] sm:$0x1]  ;;  %s277_s1 = smov [#allocation5]  }
  0x18   :  { %v165_v35 = vadd.f32 1e-10, %v37_v33  ;;  %v147_v37 = vsub.s32 0, %v146_v36  ;;  %v195_v40 = vld [vmem:[%s348_s2] ss:$0 sm:$0xff]  ;;  %s185_s12 = sshll.u32 %s277_s1, 4  ;;  %s186_s12 = int_to_ptr.vmem [resolvable:$true] %s185_s12 }
  0x19   :  { %v43_v9 = vadd.f32 %v42_v8, %v41_v6  ;;  %s244_s13 = scalar_lea.vmem %s186_s12, 128  ;;  %p249_p9 = scmp.lt.s32.totalorder %s186_s12, %s186_s12 }
  0x1a   :  { %v148_v38 = vrot.slane %v37_v33, %v147_v37  ;;  %p245_p8 = scmp.ne.s32.totalorder %s186_s12, %s244_s13  ;;  %p250_p10 = scmp.lt.s32.totalorder %s244_s13, %s244_s13 }
  0x1b   :  { %v44_v10 = vrot.slane %v43_v9, 2 }
  0x1c   :  { %p251_p11 = por %p250_p10, %p249_p9 }
  0x1d   :  { %v45_v11 = vadd.f32 %v44_v10, %v43_v9 }
  0x1e   :  { %p252_p12 = pnand %p251_p11, %p245_p8 }
  0x1f   :  { %v46_v12 = vrot.slane %v45_v11, 1 }
  0x21   :  { %v47_v13 = vadd.f32 %v46_v12, %v45_v11 }
  0x23   :  { %v49_v14 = vmul.f32 0.0625, %v47_v13 }
  0x25   :  { %v50_v15 = vsub.f32 %v35_v3, %v49_v14  ;;  %v51_v16 = vsub.f32 %v36_v4, %v49_v14 }
  0x27   :  { %v52_v17 = vmul.f32 %v50_v15, %v50_v15  ;;  %v53_v18 = vmul.f32 %v51_v16, %v51_v16 }
  0x29   :  { %v54_v19 = vadd.f32 %v53_v18, %v52_v17 }
  0x2b   :  { %v55_v21 = vrot.slane %v54_v19, 4 }
  0x2d   :  { %161 = vperm.xlu0 %217, %v40_v20   ;;  %v56_v22 = vadd.f32 %v55_v21, %v54_v19 }
  0x2f   :  { %v57_v23 = vrot.slane %v56_v22, 2 }
  0x31   :  { %v58_v24 = vadd.f32 %v57_v23, %v56_v22 }
  0x33   :  { %v59_v25 = vrot.slane %v58_v24, 1 }
  0x35   :  { %v60_v26 = vadd.f32 %v59_v25, %v58_v24 }
  0x37   :  { %v61_v27 = vmul.f32 0.0625, %v60_v26 }
  0x39   :  { %v62_v28 = vadd.f32 1e-05, %v61_v27 }
  0x3b   :  { %218 = vrsqrt.f32 %v62_v28 }
  0x3c   :  { %220 = vrcp.f32 %v165_v35 }
  0x45   :  { %v219_v29 = vpop.eup %218 }
  0x46   :  { %v65_v30 = vmul.f32 %v219_v29, %v50_v15  ;;  %v66_v31 = vmul.f32 %v219_v29, %v51_v16  ;;  %v221_v45 = vpop.eup %220  ;;  %v64_v51 = vmul.f32 %v219_v29, %v62_v28 }
  0x47   :  { %v173_v49 = vrot.slane %v221_v45, %v147_v37 }
  0x48   :  { %v207_v32 = vpack.c.bf16 %v66_v31, %v65_v30 }
  0x4a   :  { %208 = vmatpush3.bf16.msra.mxu0 %v207_v32 }
  0x4d   :  { %204 = vmatmul.mubr.msk.f32.vlgmr.msra.gmra.mrb[0].mxu0 %vm67_vm1, %v39_v5 }
  0xa4   :  { %v143_v39 = vpop.xlane.xlu0 %142 }
  0xa5   :  { %v157_v42 = vmul.f32 %v195_v40, %v143_v39 }
  0xac   :  { %v162_v46 = vpop.permute.xlu0 %161 }
 0x120   :  { %v137_v41 = vpop.f32.mrb[0].mxu0 }
 0x121   :  { %v150_v43 = vmul.f32 %v148_v38, %v137_v41  ;;  %v205_v44 = vpop.f32.mrb[1].mxu0 }
 0x123   :  { %v158_v47 = vadd.f32 %v157_v42, %v150_v43 }
 0x125   :  { %v164_v48 = vadd.f32 %v162_v46, %v158_v47 }
 0x127   :  { %v168_v50 = vsub.f32 %v164_v48, %v195_v40 }
 0x129   :  { %v175_v52 = vmul.f32 %v173_v49, %v168_v50 }
 0x12b   :  { %v176_v53 = vmul.f32 %v175_v52, %v64_v51 }
 0x12d   :  { %v177_v54 = vadd.f32 %v176_v53, %v49_v14 }
 0x12f   :  { %178 = vst [vmem:[#allocation5] sm:$0xff] %v177_v54 }
 0x130   :  { %255 = shalt.err (!%p252_p12)
}
 0x131   :  { %s256_s15 = scalar_lea.hbm %s351_s5, 128 }
 0x132   :  { %p257_p13 = scmp.ne.s32.totalorder %s351_s5, %s256_s15  ;;  %p260_p0 = scmp.lt.u32.totalorder %s256_s15, %s351_s5 }
 0x134   :  { %p262_p1 = pnand %p260_p0, %p257_p13 }
 0x136   :  { %265 = shalt.err (!%p262_p1)
}
 0x137   :  { %188 = dma.vmem_to_hbm [thread:$0]  %s186_s12, 128, %s351_s5, [#allocation4]  }
 0x138   :  { %268 = dma.done.wait [#allocation4], 128  }
 0x139   :  { %269 = vsyncadd [#allocation4], 4294967168 }
 0x13a   :  { %192 = vsyncpa [#allocation3], 1 }
 0x13b   :  { %193 = vsyncpa [#allocation4], 1 }

</bundles_post_ra>
